<compile_context>
chip_gen: v7x
topology: tpu7x:2x2x1
jax: 0.10.0
libtpu: 0.0.40
codegen_flags: <defaults>
</compile_context>

<pallas_src>
import jax
import jax.numpy as jnp
from jax.experimental import pallas as pl
from jax.experimental.pallas import tpu as pltpu


# --------------------------------------------------------------------------- #
# Kernel
# --------------------------------------------------------------------------- #
def _rnn_cell_kernel(x_ref, h_ref, wi_ref, bi_ref, wh_ref, bh_ref, out_ref):
    """One (column-tile, batch-tile) grid step of the RNN cell.

    x_ref : [TB, Inp]  caller dtype        (cast to compute dtype in-kernel)
    h_ref : [TB, Hp]   caller dtype        (cast to compute dtype in-kernel)
    wi_ref: [Inp, TN]  compute dtype (bf16/f32), resident / streamed col tile
    wh_ref: [Hp,  TN]  compute dtype
    bi_ref, bh_ref: [1, TN] f32
    out_ref: [TB, TN]  caller dtype
    """
    cdt = wi_ref.dtype
    x = x_ref[...].astype(cdt)
    h = h_ref[...].astype(cdt)

    # MXU matmuls with f32 accumulation.
    ih = jnp.dot(x, wi_ref[...], preferred_element_type=jnp.float32) + bi_ref[...]
    hh = jnp.dot(h, wh_ref[...], preferred_element_type=jnp.float32) + bh_ref[...]

    # NOTE: pre-folding (bi + bh) does not reduce the add count (still
    # 2 broadcast + 2 full TBxTN adds either way), so it is not done.
    act = jnp.maximum(ih + hh, 0.0)
    out_ref[...] = jnp.maximum(act + hh, 0.0).astype(out_ref.dtype)


# --------------------------------------------------------------------------- #
# Padding / tiling helpers
# --------------------------------------------------------------------------- #
def _round_up(n, m):
    return ((n + m - 1) // m) * m


def _pad2d(a, rows, cols):
    r, c = a.shape
    if r == rows and c == cols:
        return a
    return jnp.zeros((rows, cols), a.dtype).at[:r, :c].set(a)


def _vmem_capacity_bytes():
    try:
        return int(pltpu.get_tpu_info().vmem_capacity_bytes)
    except Exception:
        return 64 << 20  # v7x per-TensorCore VMEM: the smallest across v5e/v6e/v7x


def batch_padding(batch):
    """Pick (batch_tile, padded_batch).

    >= 2 tiles whenever B > 8 so the "parallel" batch axis can map to both v7x
    TensorCores; the tile is capped at 256 rows (256-wide MXU pass on v6e/v7x).
    """
    b8 = _round_up(max(int(batch), 1), 8)
    if b8 <= 8:
        return 8, 8
    tb = min(256, _round_up((b8 + 1) // 2, 8))
    return tb, _round_up(b8, tb)


def _divisor_batch_tile(bp):
    """Batch tile for an already-padded batch dimension (must divide bp)."""
    if bp <= 8 or bp % 8 != 0:
        return bp
    start = (min(256, max(bp // 2, 8)) // 8) * 8
    for tb in range(start, 7, -8):
        if bp % tb == 0:
            return tb
    return bp


def _choose_col_tile(hp, fixed_bytes, per_col_bytes, budget):
    """Largest output-column tile (multiple of 128 that divides hp) fitting budget."""
    m = hp // 128
    for d in range(m, 0, -1):
        if m % d:
            continue
        tn = 128 * d
        if fixed_bytes + tn * per_col_bytes <= budget:
            return tn
    return 128


# --------------------------------------------------------------------------- #
# Parameter preparation (once per model, NOT per timestep)
# --------------------------------------------------------------------------- #
def prepare_params(wi, bi, wh, bh, *, compute_dtype=jnp.bfloat16):
    """Pad + cast the cell parameters once.

    wi: [In, H], bi: [H], wh: [H, H], bh: [H]   (weights stored as [in, out],
    i.e. already transposed relative to PyTorch nn.Linear's [out, in]).
    """
    In, H = wi.shape
    assert wh.shape == (H, H) and bi.shape == (H,) and bh.shape == (H,)
    # Lane-dense contraction dim only when it is large; tiny In (e.g. 16) stays.
    Inp = In if In <= 128 else _round_up(In, 128)
    Hp = _round_up(H, 128)
    return {
        "wi": _pad2d(wi.astype(compute_dtype), Inp, Hp),
        "bi": _pad2d(bi.astype(jnp.float32).reshape(1, H), 1, Hp),
        "wh": _pad2d(wh.astype(compute_dtype), Hp, Hp),
        "bh": _pad2d(bh.astype(jnp.float32).reshape(1, H), 1, Hp),
    }


# --------------------------------------------------------------------------- #
# Cell step (padded operands; use this when carrying state across timesteps)
# --------------------------------------------------------------------------- #
def custom_rnn_cell_padded(x_p, h_p, params, *, batch_tile=None):
    """One cell step on padded operands.

    x_p: [Bp, Inp], h_p: [Bp, Hp] (zero-padded).  Returns the new padded
    hidden state [Bp, Hp].  Padded rows/columns never contaminate the valid
    region (rows are independent; padded weight columns and biases are zero),
    so the state can be carried padded across all timesteps and sliced once.
    """
    Bp, Inp = x_p.shape
    Bh, Hp = h_p.shape
    assert Bh == Bp and params["wi"].shape == (Inp, Hp)
    TB = int(batch_tile) if batch_tile is not None else _divisor_batch_tile(Bp)
    assert Bp % TB == 0 and (TB % 8 == 0 or TB == Bp)
    n_btiles = Bp // TB

    act_bytes = x_p.dtype.itemsize
    w_bytes = params["wi"].dtype.itemsize

    # Per-grid-step VMEM footprint (bytes): x/h/out and weight column tiles are
    # counted with double buffering; f32 elementwise temporaries (ih/hh/act/out)
    # and the in-kernel compute-dtype casts are included explicitly.
    cap = _vmem_capacity_bytes()
    budget = int(0.75 * cap)
    fixed = 2 * TB * (Inp + Hp) * act_bytes          # x, h blocks (x2 buffers)
    fixed += TB * (Inp + Hp) * w_bytes               # in-kernel casts of x, h
    per_col = 2 * (Inp + Hp) * w_bytes               # Wi, Wh column tiles (x2)
    per_col += 2 * 2 * 4                             # bi, bh rows (x2)
    per_col += 2 * TB * act_bytes                    # out block (x2 buffers)
    per_col += 4 * TB * 4                            # ih/hh/act/out f32 temps
    # TODO(synk): at extreme Hp where even TN=128 overflows the budget, also
    # shrink TB instead of relying on the compiler to spill.
    TN = _choose_col_tile(Hp, fixed, per_col, budget)
    n_ntiles = Hp // TN
    need = fixed + TN * per_col
    vmem_limit = int(min(max(need + (4 << 20), 16 << 20), int(0.9 * cap)))

    # In-place hidden-state update is only legal when each batch-row tile is
    # visited exactly once (n_ntiles == 1); with column streaming, later grid
    # steps would re-read rows whose columns were already overwritten.
    alias = {1: 0} if (n_ntiles == 1 and h_p.dtype == x_p.dtype) else {}

    out_p = pl.pallas_call(
        _rnn_cell_kernel,
        out_shape=jax.ShapeDtypeStruct((Bp, Hp), x_p.dtype),
        grid_spec=pltpu.PrefetchScalarGridSpec(
            num_scalar_prefetch=0,
            # Column axis outermost: each Wi/Wh column tile is DMA'd exactly
            # once while batch tiles stream underneath it.
            grid=(n_ntiles, n_btiles),
            in_specs=[
                pl.BlockSpec((TB, Inp), lambda j, i: (i, 0)),   # x      (per batch tile)
                pl.BlockSpec((TB, Hp), lambda j, i: (i, 0)),    # hidden (per batch tile)
                pl.BlockSpec((Inp, TN), lambda j, i: (0, j)),   # Wi     (resident / col tile)
                pl.BlockSpec((1, TN), lambda j, i: (0, j)),     # bi
                pl.BlockSpec((Hp, TN), lambda j, i: (0, j)),    # Wh     (resident / col tile)
                pl.BlockSpec((1, TN), lambda j, i: (0, j)),     # bh
            ],
            out_specs=pl.BlockSpec((TB, TN), lambda j, i: (i, j)),  # lane-dense output
        ),
        input_output_aliases=alias,
        compiler_params=pltpu.CompilerParams(
            dimension_semantics=("parallel", "parallel"),
            vmem_limit_bytes=vmem_limit,
        ),
    )(x_p, h_p, params["wi"], params["bi"], params["wh"], params["bh"])
    return out_p


# --------------------------------------------------------------------------- #
# One-off convenience entry point (pads per call, returns [B, H])
# --------------------------------------------------------------------------- #
def custom_rnn_cell(x, hidden, params):
    B = x.shape[0]
    H = hidden.shape[1]
    Inp, Hp = params["wi"].shape
    TB, Bp = batch_padding(B)
    x_p = _pad2d(x, Bp, Inp)
    h_p = _pad2d(hidden, Bp, Hp)
    out_p = custom_rnn_cell_padded(x_p, h_p, params, batch_tile=TB)
    return out_p[:B, :H]


# --------------------------------------------------------------------------- #
# Init / reference
# --------------------------------------------------------------------------- #
def init_params(key, input_size, hidden_size, dtype=jnp.float32):
    """nn.Linear-style init (uniform +-1/sqrt(fan_in)); weights stored [in, out]."""
    k1, k2, k3, k4 = jax.random.split(key, 4)
    bound_i = 1.0 / (input_size ** 0.5)
    bound_h = 1.0 / (hidden_size ** 0.5)
    wi = jax.random.uniform(k1, (input_size, hidden_size), dtype, -bound_i, bound_i)
    bi = jax.random.uniform(k2, (hidden_size,), dtype, -bound_i, bound_i)
    wh = jax.random.uniform(k3, (hidden_size, hidden_size), dtype, -bound_h, bound_h)
    bh = jax.random.uniform(k4, (hidden_size,), dtype, -bound_h, bound_h)
    return wi, bi, wh, bh


def reference(x, hidden, wi, bi, wh, bh):
    ih = x @ wi + bi
    hh = hidden @ wh + bh
    act = jnp.maximum(ih + hh, 0.0)
    return jnp.maximum(act + hh, 0.0)


if __name__ == "__main__":
    batch, input_size, hidden_size = 2, 16, 32

    key = jax.random.PRNGKey(0)
    kx, kh, kp, ks = jax.random.split(key, 4)
    x = jax.random.normal(kx, (batch, input_size), jnp.float32)
    hidden = jax.random.normal(kh, (batch, hidden_size), jnp.float32)
    wi, bi, wh, bh = init_params(kp, input_size, hidden_size)
    ref = reference(x, hidden, wi, bi, wh, bh)

    # 1) Exact mode (f32 MXU path) — bit-tight vs. reference.
    params_f32 = prepare_params(wi, bi, wh, bh, compute_dtype=jnp.float32)
    out_f32 = jax.block_until_ready(custom_rnn_cell(x, hidden, params_f32))
    assert out_f32.shape == (batch, hidden_size)
    assert jnp.allclose(out_f32, ref, atol=1e-5, rtol=1e-5)

    # 2) Default fast mode (bf16 MXU inputs, f32 accumulation) — loose tolerance.
    params_bf16 = prepare_params(wi, bi, wh, bh)  # compute_dtype=bf16
    out_bf16 = jax.block_until_ready(custom_rnn_cell(x, hidden, params_bf16))
    assert out_bf16.shape == (batch, hidden_size)
    assert jnp.allclose(out_bf16, ref, atol=5e-2, rtol=5e-2)

    # 3) Padded-state carry across 3 timesteps: pad once, update the aliased
    #    padded state in place each step, slice back to [B, H] only at the end.
    TB, Bp = batch_padding(batch)
    Inp, Hp = params_f32["wi"].shape
    xs = jax.random.normal(ks, (3, batch, input_size), jnp.float32)
    h_p = _pad2d(hidden, Bp, Hp)
    h_ref = hidden
    for t in range(3):
        x_p = _pad2d(xs[t], Bp, Inp)
        h_p = custom_rnn_cell_padded(x_p, h_p, params_f32, batch_tile=TB)
        h_ref = reference(xs[t], h_ref, wi, bi, wh, bh)
    h_p = jax.block_until_ready(h_p)
    assert jnp.allclose(h_p[:batch, :hidden_size], h_ref, atol=1e-5, rtol=1e-5)

    print("KERNEL_OK")
</pallas_src>

<mosaic_0001>
module attributes {stable_mosaic.version = 11 : i64} {
  func.func @_rnn_cell_kernel(%arg0: i32, %arg1: i32, %arg2: memref<8x16xf32, #tpu.memory_space<vmem>>, %arg3: memref<8x128xf32, #tpu.memory_space<vmem>>, %arg4: memref<16x128xf32, #tpu.memory_space<vmem>>, %arg5: memref<1x128xf32, #tpu.memory_space<vmem>>, %arg6: memref<128x128xf32, #tpu.memory_space<vmem>>, %arg7: memref<1x128xf32, #tpu.memory_space<vmem>>, %arg8: memref<8x128xf32, #tpu.memory_space<vmem>>) attributes {dimension_semantics = [#tpu.dimension_semantics<parallel>, #tpu.dimension_semantics<parallel>], iteration_bounds = array<i64: 1, 1>, scalar_prefetch = 0 : i64, scratch_operands = 0 : i64, tpu.core_type = #tpu.core_type<tc>, window_params = [{transform_indices = @transform_0, window_bounds = array<i64: 8, 16>}, {transform_indices = @transform_1, window_bounds = array<i64: 8, 128>}, {transform_indices = @transform_2, window_bounds = array<i64: 16, 128>}, {transform_indices = @transform_3, window_bounds = array<i64: 1, 128>}, {transform_indices = @transform_4, window_bounds = array<i64: 128, 128>}, {transform_indices = @transform_5, window_bounds = array<i64: 1, 128>}, {transform_indices = @transform_6, window_bounds = array<i64: 8, 128>}]} {
    %c0 = arith.constant 0 : index
    %c0_0 = arith.constant 0 : index
    %0 = vector.load %arg2[%c0, %c0_0] : memref<8x16xf32, #tpu.memory_space<vmem>>, vector<8x16xf32>
    %c0_1 = arith.constant 0 : index
    %c0_2 = arith.constant 0 : index
    %1 = vector.load %arg3[%c0_1, %c0_2] : memref<8x128xf32, #tpu.memory_space<vmem>>, vector<8x128xf32>
    %c0_3 = arith.constant 0 : index
    %c0_4 = arith.constant 0 : index
    %2 = vector.load %arg4[%c0_3, %c0_4] : memref<16x128xf32, #tpu.memory_space<vmem>>, vector<16x128xf32>
    %cst = arith.constant dense<0.000000e+00> : vector<8x128xf32>
    %3 = tpu.matmul %0, %2, %cst {dimension_numbers = #tpu.dot_dimension_numbers<[1], [0], [0], [1], [0, 0, 1, 1], [], []>} : vector<8x16xf32>, vector<16x128xf32>, vector<8x128xf32> -> vector<8x128xf32>
    %c0_5 = arith.constant 0 : index
    %c0_6 = arith.constant 0 : index
    %4 = vector.load %arg5[%c0_5, %c0_6] : memref<1x128xf32, #tpu.memory_space<vmem>>, vector<1x128xf32>
    %5 = vector.broadcast %4 : vector<1x128xf32> to vector<8x128xf32>
    %6 = arith.addf %3, %5 : vector<8x128xf32>
    %c0_7 = arith.constant 0 : index
    %c0_8 = arith.constant 0 : index
    %7 = vector.load %arg6[%c0_7, %c0_8] : memref<128x128xf32, #tpu.memory_space<vmem>>, vector<128x128xf32>
    %cst_9 = arith.constant dense<0.000000e+00> : vector<8x128xf32>
    %8 = tpu.matmul %1, %7, %cst_9 {dimension_numbers = #tpu.dot_dimension_numbers<[1], [0], [0], [1], [0, 0, 1, 1], [], []>} : vector<8x128xf32>, vector<128x128xf32>, vector<8x128xf32> -> vector<8x128xf32>
    %c0_10 = arith.constant 0 : index
    %c0_11 = arith.constant 0 : index
    %9 = vector.load %arg7[%c0_10, %c0_11] : memref<1x128xf32, #tpu.memory_space<vmem>>, vector<1x128xf32>
    %10 = vector.broadcast %9 : vector<1x128xf32> to vector<8x128xf32>
    %11 = arith.addf %8, %10 : vector<8x128xf32>
    %12 = arith.addf %6, %11 : vector<8x128xf32>
    %cst_12 = arith.constant 0.000000e+00 : f32
    %13 = vector.broadcast %cst_12 : f32 to vector<8x128xf32>
    %14 = arith.maximumf %12, %13 : vector<8x128xf32>
    %15 = arith.addf %14, %11 : vector<8x128xf32>
    %cst_13 = arith.constant 0.000000e+00 : f32
    %16 = vector.broadcast %cst_13 : f32 to vector<8x128xf32>
    %17 = arith.maximumf %15, %16 : vector<8x128xf32>
    %c0_14 = arith.constant 0 : index
    %c0_15 = arith.constant 0 : index
    %18 = vector.load %arg8[%c0_14, %c0_15] : memref<8x128xf32, #tpu.memory_space<vmem>>, vector<8x128xf32>
    tpu.vector_store %arg8[%c0_14, %c0_15], %17 {strides = array<i32>} : memref<8x128xf32, #tpu.memory_space<vmem>>, vector<8x128xf32>,
    return
  }
  func.func @transform_0(%arg0: i32, %arg1: i32) -> (i32, i32) {
    %c0_i32 = arith.constant 0 : i32
    %c0_i32_0 = arith.constant 0 : i32
    return %arg1, %c0_i32 : i32, i32
  }
  func.func @transform_1(%arg0: i32, %arg1: i32) -> (i32, i32) {
    %c0_i32 = arith.constant 0 : i32
    %c0_i32_0 = arith.constant 0 : i32
    return %arg1, %c0_i32 : i32, i32
  }
  func.func @transform_2(%arg0: i32, %arg1: i32) -> (i32, i32) {
    %c0_i32 = arith.constant 0 : i32
    %c0_i32_0 = arith.constant 0 : i32
    return %c0_i32, %arg0 : i32, i32
  }
  func.func @transform_3(%arg0: i32, %arg1: i32) -> (i32, i32) {
    %c0_i32 = arith.constant 0 : i32
    %c0_i32_0 = arith.constant 0 : i32
    return %c0_i32, %arg0 : i32, i32
  }
  func.func @transform_4(%arg0: i32, %arg1: i32) -> (i32, i32) {
    %c0_i32 = arith.constant 0 : i32
    %c0_i32_0 = arith.constant 0 : i32
    return %c0_i32, %arg0 : i32, i32
  }
  func.func @transform_5(%arg0: i32, %arg1: i32) -> (i32, i32) {
    %c0_i32 = arith.constant 0 : i32
    %c0_i32_0 = arith.constant 0 : i32
    return %c0_i32, %arg0 : i32, i32
  }
  func.func @transform_6(%arg0: i32, %arg1: i32) -> (i32, i32) {
    %c0_i32 = arith.constant 0 : i32
    return %arg1, %arg0 : i32, i32
  }
}

</mosaic_0001>

<bundles_post_ra>
// kernel: tpu_custom_call.1
= control target key start
LH: loop header
LB: loop body
LE: loop exit
PB: predicated region body
PF: predicated region fallthrough
CT: control target
= control target key end

     0   :  { %11 = vsyncpa [#allocation3], 0  ;;  %s522_s0 = inlined_call_operand.vmem [shape: f32[8,16], index: 0, kind: input, shape index: {}]   ;;  %s523_s1 = inlined_call_operand.hbm [shape: f32[8,128], index: 1, kind: input, shape index: {}, may-alias: {1,6}]   ;;  %s524_s2 = inlined_call_operand.vmem [shape: f32[16,128], index: 2, kind: input, shape index: {}]   ;;  %s525_s3 = inlined_call_operand.vmem [shape: f32[1,128], index: 3, kind: input, shape index: {}]   ;;  %s526_s4 = inlined_call_operand.hbm [shape: f32[128,128], index: 4, kind: input, shape index: {}]   ;;  %s527_s5 = inlined_call_operand.vmem [shape: f32[1,128], index: 5, kind: input, shape index: {}]   ;;  %s528_s6 = inlined_call_operand.hbm [shape: f32[8,128], index: 6, kind: output, shape index: {}, may-alias: {1,6}]  }
   0x1   :  { %12 = vsyncpa [#allocation6], 0 }
   0x2   :  { %13 = vsyncpa [#allocation4], 0  ;;  %s421_s21 = smov [#allocation2]   ;;  %s422_s23 = smov [#allocation5]  }
   0x3   :  { %s22_s22 = sshll.u32 %s421_s21, 4  ;;  %s35_s24 = sshll.u32 %s422_s23, 4  ;;  %s23_s22 = int_to_ptr.vmem [resolvable:$true] %s22_s22  ;;  %s464_s24 = int_to_ptr.vmem [resolvable:$true] %s35_s24 }
   0x4   :  { %s349_s27 = scalar_lea.hbm %s523_s1, 128 }
   0x5   :  { %p350_p0 = scmp.ne.s32.totalorder %s523_s1, %s349_s27  ;;  %p353_p1 = scmp.lt.u32.totalorder %s349_s27, %s523_s1 }
   0x7   :  { %p355_p2 = pnand %p353_p1, %p350_p0 }
   0x9   :  { %358 = shalt.err (!%p355_p2)
}
   0xa   :  { %s359_s8 = scalar_lea.vmem %s23_s22, 128  ;;  %p364_p4 = scmp.lt.s32.totalorder %s23_s22, %s23_s22 }
   0xb   :  { %p360_p3 = scmp.ne.s32.totalorder %s23_s22, %s359_s8  ;;  %p365_p5 = scmp.lt.s32.totalorder %s359_s8, %s359_s8 }
   0xd   :  { %p366_p6 = por %p365_p5, %p364_p4 }
   0xf   :  { %p367_p7 = pnand %p366_p6, %p360_p3 }
  0x11   :  { %370 = shalt.err (!%p367_p7)
}
  0x12   :  { %25 = dma.hbm_to_vmem [thread:$0]  %s523_s1, 128, %s23_s22, [#allocation3]  }
  0x13   :  { %s371_s13 = scalar_lea.hbm %s526_s4, 2048 }
  0x14   :  { %p372_p8 = scmp.ne.s32.totalorder %s526_s4, %s371_s13  ;;  %p375_p9 = scmp.lt.u32.totalorder %s371_s13, %s526_s4 }
  0x16   :  { %p377_p10 = pnand %p375_p9, %p372_p8 }
  0x18   :  { %380 = shalt.err (!%p377_p10)
}
  0x19   :  { %s381_s18 = scalar_lea.vmem %s464_s24, 2048  ;;  %p386_p12 = scmp.lt.s32.totalorder %s464_s24, %s464_s24 }
  0x1a   :  { %p382_p11 = scmp.ne.s32.totalorder %s464_s24, %s381_s18  ;;  %p387_p13 = scmp.lt.s32.totalorder %s381_s18, %s381_s18 }
  0x1c   :  { %p388_p0 = por %p387_p13, %p386_p12 }
  0x1e   :  { %p389_p1 = pnand %p388_p0, %p382_p11 }
  0x20   :  { %392 = shalt.err (!%p389_p1)
}
  0x21   :  { %s423_s1 = smov 128   ;;  %s424_s19 = smov 8  }
  0x22   :  { %41 = dma.hbm_to_vmem [thread:$0]  %s526_s4, 2048, %s464_s24, [#allocation6], %s423_s1, %s423_s1, %s424_s19  }
  0x23   :  { %415 = dma.done.wait [#allocation3], 128  }
  0x24   :  { %416 = vsyncadd [#allocation3], 4294967168 }
  0x25   :  { %417 = dma.done.wait [#allocation6], 2048  }
  0x26   :  { %418 = vsyncadd [#allocation6], 4294965248  ;;  %v425_v0 = vmov 0.0|0.0   ;;  %vm426_vm0 = vmmov 0   ;;  %v427_v1 = vmov 0.0   ;;  %v135_v2 = vld [vmem:[#allocation5] sm:$0xff] }
  0x27   :  { %317 = vmatprep.subr.bf16.mxu1 %v425_v0  ;;  %314 = vmatprep.subr.bf16.mxu0 %v425_v0  ;;  %v136_v3 = vld [vmem:[#allocation5 + $0x8] sm:$0xff]  ;;  %v137_v4 = vld [vmem:[#allocation5 + $0x10] sm:$0xff]  ;;  %v138_v6 = vld [vmem:[#allocation5 + $0x18] sm:$0xff]  ;;  %vm61_vm1 = vcmask 130048   ;;  %s428_s29 = smov [#allocation7]  }
  0x28   :  { %276 = vmatprep.mubr.msk.f32.mxu0 %vm426_vm0, %v427_v1  ;;  %311 = vmatprep.mubr.msk.f32.mxu1 %vm426_vm0, %v427_v1  ;;  %v318_v5 = vpack.c.bf16 %v136_v3, %v135_v2  ;;  %v321_v7 = vpack.c.bf16 %v138_v6, %v137_v4  ;;  %v139_v8 = vld [vmem:[#allocation5 + $0x20] sm:$0xff]  ;;  %v140_v9 = vld [vmem:[#allocation5 + $0x28] sm:$0xff]  ;;  %v52_v10 = vld [vmem:[%s524_s2] sm:$0xff]  ;;  %s239_s30 = sshll.u32 %s428_s29, 4  ;;  %s240_s30 = int_to_ptr.vmem [resolvable:$true] %s239_s30 }
  0x29   :  { %v53_v11 = vld [vmem:[%s524_s2 + $0x8] sm:$0xff]  ;;  %v324_v13 = vpack.c.bf16 %v140_v9, %v139_v8  ;;  %v141_v14 = vld [vmem:[#allocation5 + $0x30] sm:$0xff]  ;;  %v142_v15 = vld [vmem:[#allocation5 + $0x38] sm:$0xff]  ;;  %s393_s7 = scalar_lea.vmem %s240_s30, 128  ;;  %p398_p3 = scmp.lt.s32.totalorder %s240_s30, %s240_s30 }
  0x2a   :  { %319 = vmatpush3.bf16.msra.mxu1 %v318_v5  ;;  %v315_v12 = vpack.c.bf16 %v53_v11, %v52_v10  ;;  %v50_v16 = vld [vmem:[%s522_s0] sm:$0xff]  ;;  %v327_v17 = vpack.c.bf16 %v142_v15, %v141_v14  ;;  %v143_v18 = vld [vmem:[#allocation5 + $0x40] sm:$0xff]  ;;  %v144_v19 = vld [vmem:[#allocation5 + $0x48] sm:$0xff]  ;;  %p394_p2 = scmp.ne.s32.totalorder %s240_s30, %s393_s7  ;;  %p399_p4 = scmp.lt.s32.totalorder %s393_s7, %s393_s7 }
  0x2b   :  { %320 = vmatprep.subr.bf16.mxu1 %v425_v0  ;;  %v330_v20 = vpack.c.bf16 %v144_v19, %v143_v18  ;;  %v145_v21 = vld [vmem:[#allocation5 + $0x50] sm:$0xff]  ;;  %v146_v22 = vld [vmem:[#allocation5 + $0x58] sm:$0xff]  ;;  %v147_v24 = vld [vmem:[#allocation5 + $0x60] sm:$0xff] }
  0x2c   :  { %316 = vmatpush3.bf16.msra.mxu0 %v315_v12  ;;  %v333_v23 = vpack.c.bf16 %v146_v22, %v145_v21  ;;  %v148_v25 = vld [vmem:[#allocation5 + $0x68] sm:$0xff]  ;;  %v149_v27 = vld [vmem:[#allocation5 + $0x70] sm:$0xff]  ;;  %v150_v28 = vld [vmem:[#allocation5 + $0x78] sm:$0xff]  ;;  %p400_p5 = por %p399_p4, %p398_p3 }
  0x2d   :  { %v336_v26 = vpack.c.bf16 %v148_v25, %v147_v24  ;;  %v339_v29 = vpack.c.bf16 %v150_v28, %v149_v27  ;;  %v51_v30 = vld [vmem:[#allocation2] sm:$0xff] }
  0x2e   :  { %322 = vmatpush3.bf16.msra.mxu1 %v321_v7  ;;  %v249_v33 = vld [vmem:[%s525_s3] ss:$0 sm:$0xff]  ;;  %p401_p6 = pnand %p400_p5, %p394_p2 }
  0x2f   :  { %323 = vmatprep.subr.bf16.mxu1 %v425_v0  ;;  %277 = vmatmul.mubr.msk.f32.vlgmr.msra.gmra.mrb[0].mxu0 %vm61_vm1, %v50_v16  ;;  %v251_v34 = vld [vmem:[%s527_s5] ss:$0 sm:$0xff] }
  0x32   :  { %325 = vmatpush3.bf16.msra.mxu1 %v324_v13 }
  0x33   :  { %326 = vmatprep.subr.bf16.mxu1 %v425_v0 }
  0x36   :  { %328 = vmatpush3.bf16.msra.mxu1 %v327_v17 }
  0x37   :  { %329 = vmatprep.subr.bf16.mxu1 %v425_v0 }
  0x3a   :  { %331 = vmatpush3.bf16.msra.mxu1 %v330_v20 }
  0x3b   :  { %332 = vmatprep.subr.bf16.mxu1 %v425_v0 }
  0x3e   :  { %334 = vmatpush3.bf16.msra.mxu1 %v333_v23 }
  0x3f   :  { %335 = vmatprep.subr.bf16.mxu1 %v425_v0 }
  0x42   :  { %337 = vmatpush3.bf16.msra.mxu1 %v336_v26 }
  0x43   :  { %338 = vmatprep.subr.bf16.mxu1 %v425_v0 }
  0x46   :  { %340 = vmatpush3.bf16.msra.mxu1 %v339_v29 }
  0x49   :  { %312 = vmatmul.mubr.f32.vlgmr.msra.gmra.mrb[0].mxu1 %v51_v30 }
 0x102   :  { %v131_v31 = vpop.f32.mrb[0].mxu0 }
 0x103   :  { %v278_v32 = vpop.f32.mrb[1].mxu0  ;;  %v132_v35 = vadd.f32 %v249_v33, %v131_v31 }
 0x11c   :  { %v224_v36 = vpop.f32.mrb[0].mxu1 }
 0x11d   :  { %v225_v37 = vadd.f32 %v251_v34, %v224_v36  ;;  %v313_v38 = vpop.f32.mrb[1].mxu1 }
 0x11f   :  { %v228_v39 = vadd.f32 %v225_v37, %v132_v35 }
 0x121   :  { %v229_v40 = vmax.f32 %v228_v39, 0.0 }
 0x123   :  { %v230_v41 = vadd.f32 %v229_v40, %v225_v37 }
 0x125   :  { %v231_v42 = vmax.f32 %v230_v41, 0.0 }
 0x127   :  { %232 = vst [vmem:[#allocation7] sm:$0xff] %v231_v42 }
 0x128   :  { %404 = shalt.err (!%p401_p6)
}
 0x129   :  { %s405_s8 = scalar_lea.hbm %s528_s6, 128 }
 0x12a   :  { %p406_p7 = scmp.ne.s32.totalorder %s528_s6, %s405_s8  ;;  %p409_p8 = scmp.lt.u32.totalorder %s405_s8, %s528_s6 }
 0x12c   :  { %p411_p9 = pnand %p409_p8, %p406_p7 }
 0x12e   :  { %414 = shalt.err (!%p411_p9)
}
 0x12f   :  { %242 = dma.vmem_to_hbm [thread:$0]  %s240_s30, 128, %s528_s6, [#allocation4]  }
 0x130   :  { %419 = dma.done.wait [#allocation4], 128  }
 0x131   :  { %420 = vsyncadd [#allocation4], 4294967168 }
 0x132   :  { %246 = vsyncpa [#allocation3], 1 }
 0x133   :  { %247 = vsyncpa [#allocation6], 1 }
 0x134   :  { %248 = vsyncpa [#allocation4], 1 }

</bundles_post_ra>
